<compile_context>
chip_gen: v7x
topology: tpu7x:2x2x1
jax: 0.10.0
libtpu: 0.0.40
codegen_flags: <defaults>
</compile_context>

<pallas_src>
import functools

import jax
import jax.numpy as jnp
from jax.experimental import pallas as pl
from jax.experimental.pallas import tpu as pltpu


def spatial_gcn_kernel(x_ref, wkvq_ref, bkvq_ref, wout_ref, bout_ref, o_ref,
                       *, c, c_pad, n_valid, n_pad):
    f32 = jnp.float32

    # Fused node_k / node_v / node_q 1x1 convs: one wide MXU matmul per batch.
    kvq = jnp.dot(wkvq_ref[...], x_ref[...], preferred_element_type=f32)
    kvq = kvq + bkvq_ref[...]
    if n_pad != n_valid:
        # Zero the padded spatial columns so they do not enter q @ v^T.
        lane = jax.lax.broadcasted_iota(jnp.int32, kvq.shape, 1)
        kvq = jnp.where(lane < n_valid, kvq, 0.0)
    k = kvq[0 * c_pad:1 * c_pad, :]                                     # (Cp, N)
    v = kvq[1 * c_pad:2 * c_pad, :]
    q = kvq[2 * c_pad:3 * c_pad, :]

    # AV^T = v @ q^T  -> (Cp, Cp).  RHS-contraction dot: no transposed LHS,
    # no layout shuffle of the large (Cp, N) operands.
    a_t = jax.lax.dot_general(v, q, (((1,), (1,)), ((), ())),
                              preferred_element_type=f32)

    # PyTorch softmax(dim=2) over AV == softmax along axis 0 of AV^T.
    # Rows j >= c come from zero-padded v channels: mask them out of the
    # denominator (exact; exp underflows to 0).
    row = jax.lax.broadcasted_iota(jnp.int32, (c_pad, c_pad), 0)
    a_t = jnp.where(row < c, a_t, f32(-1e30))
    a_t = jnp.exp(a_t - jnp.max(a_t, axis=0, keepdims=True))
    a_t = a_t / jnp.sum(a_t, axis=0, keepdims=True)        # exact divide

    # (node_k^T @ AV_sm)^T == AV_sm^T @ node_k  -> (Cp, N), plain matmul.
    m = jnp.dot(a_t, k, preferred_element_type=f32)

    # conv_wg + bn_wg + out-conv + bn_out folded into one (P, Cp) weight.
    z = jnp.dot(wout_ref[...], m, preferred_element_type=f32) + bout_ref[...]
    # Residual read straight from the ref (keeps x's live range short).
    o_ref[...] = jnp.maximum(z + x_ref[...], 0.0).astype(o_ref.dtype)


def spatial_gcn(x_nchw, params):
    b, p, h, w = x_nchw.shape
    n = h * w
    c = params['w_k'].shape[0]
    eps = 1e-5
    c_pad = ((c + 7) // 8) * 8            # pad inter_plane to a sublane multiple
    n_pad = ((n + 127) // 128) * 128      # keep the lane (store) dim 128-aligned

    # ---- fold eval-mode BatchNorms into per-channel scale/shift ------------
    sg = params['bn_wg_gamma'] / jnp.sqrt(params['bn_wg_var'] + eps)
    tg = params['bn_wg_beta'] - params['bn_wg_mean'] * sg
    so = params['bn_out_gamma'] / jnp.sqrt(params['bn_out_var'] + eps)
    wo_eff = params['w_out'] * so[:, None]                              # (P, C)
    bo_eff = so * params['b_out'] + params['bn_out_beta'] - params['bn_out_mean'] * so

    # conv_wg (no bias) + bn_wg folded into the output conv (all linear, exact).
    w_fold = (wo_eff * sg[None, :]) @ params['w_g']                     # (P, C)
    b_fold = wo_eff @ tg + bo_eff                                       # (P,)

    # ---- fuse k/v/q convs into one weight, zero-pad C -> c_pad sublanes ----
    def pad_rows(a, rows):
        return jnp.pad(a, ((0, rows - a.shape[0]),) + ((0, 0),) * (a.ndim - 1))

    w_kvq = jnp.concatenate([pad_rows(params['w_k'], c_pad),
                             pad_rows(params['w_v'], c_pad),
                             pad_rows(params['w_q'], c_pad)], axis=0)   # (3Cp, P)
    b_kvq = jnp.concatenate([pad_rows(params['b_k'][:, None], c_pad),
                             pad_rows(params['b_v'][:, None], c_pad),
                             pad_rows(params['b_q'][:, None], c_pad)], axis=0)
    w_out_p = jnp.pad(w_fold, ((0, 0), (0, c_pad - c)))                 # (P, Cp)
    b_out_p = b_fold[:, None]                                           # (P, 1)

    # ---- natural layout: (B,P,H,W) -> (B,P,N) is a free reshape (no HBM copy)
    xf = x_nchw.reshape(b, p, n).astype(jnp.float32)
    if n_pad != n:
        xf = jnp.pad(xf, ((0, 0), (0, 0), (0, n_pad - n)))

    kernel = functools.partial(spatial_gcn_kernel,
                               c=c, c_pad=c_pad, n_valid=n, n_pad=n_pad)

    # Grid over batch; block = (P, N) with N as the lane dim (128-aligned).
    x_spec = pl.BlockSpec((None, p, n_pad), lambda i: (i, 0, 0))
    full_spec = lambda a: pl.BlockSpec(a.shape, lambda i: (0, 0))

    flops = 2 * b * n_pad * (3 * c_pad * p + 2 * c_pad * c_pad + p * c_pad)
    bytes_accessed = 4 * (2 * b * p * n_pad + int(w_kvq.size) + int(b_kvq.size)
                          + int(w_out_p.size) + int(b_out_p.size))
    cost = pl.CostEstimate(flops=flops, transcendentals=b * c_pad * c_pad,
                           bytes_accessed=bytes_accessed)

    # Double-buffered (P, N) in/out blocks + the per-batch (3Cp, N) kvq slab,
    # plus headroom.  Matters on v5e (16 MiB default scoped VMEM).
    vmem_est = 4 * (4 * p * n_pad + 3 * c_pad * n_pad) + (4 << 20)
    vmem_limit = int(min(100 << 20, max(32 << 20, vmem_est)))

    out = pl.pallas_call(
        kernel,
        out_shape=jax.ShapeDtypeStruct((b, p, n_pad), jnp.float32),
        grid=(b,),
        in_specs=[x_spec, full_spec(w_kvq), full_spec(b_kvq),
                  full_spec(w_out_p), full_spec(b_out_p)],
        out_specs=x_spec,
        compiler_params=pltpu.CompilerParams(
            dimension_semantics=("parallel",),      # even grid feeds both v7x TCs
            vmem_limit_bytes=vmem_limit),
        cost_estimate=cost,
    )(xf, w_kvq, b_kvq, w_out_p, b_out_p)

    if n_pad != n:
        out = out[:, :, :n]
    return out.reshape(b, p, h, w)


def spatial_gcn_ref(x, params):
    """Pure-JAX reference matching the PyTorch forward (eval-mode BN)."""
    b, p, h, w = x.shape
    n = h * w
    eps = 1e-5
    xf = x.reshape(b, p, n)

    def conv1x1(w_, b_, t):
        y = jnp.einsum('oc,bcn->bon', w_, t)
        return y if b_ is None else y + b_[None, :, None]

    nk = conv1x1(params['w_k'], params['b_k'], xf)          # (b, c, n)
    nv = conv1x1(params['w_v'], params['b_v'], xf)
    nq = conv1x1(params['w_q'], params['b_q'], xf)
    nk_t = jnp.transpose(nk, (0, 2, 1))                      # (b, n, c)
    nv_t = jnp.transpose(nv, (0, 2, 1))
    av = jnp.einsum('bcn,bnd->bcd', nq, nv_t)                # (b, c, c)
    av = jax.nn.softmax(av, axis=2)
    av = jnp.einsum('bnc,bcd->bnd', nk_t, av)                # (b, n, c)
    av = jnp.transpose(av, (0, 2, 1))                        # (b, c, n)
    avw = jnp.einsum('oc,bcn->bon', params['w_g'], av)
    avw = (avw - params['bn_wg_mean'][None, :, None]) / \
          jnp.sqrt(params['bn_wg_var'] + eps)[None, :, None]
    avw = avw * params['bn_wg_gamma'][None, :, None] + params['bn_wg_beta'][None, :, None]
    z = conv1x1(params['w_out'], params['b_out'], avw)
    z = (z - params['bn_out_mean'][None, :, None]) / \
        jnp.sqrt(params['bn_out_var'] + eps)[None, :, None]
    z = z * params['bn_out_gamma'][None, :, None] + params['bn_out_beta'][None, :, None]
    return jax.nn.relu(z + xf).reshape(b, p, h, w)


if __name__ == "__main__":
    B, P, H, W = 2, 8, 16, 16          # plane = 8  ->  inter_plane = 4
    C = P // 2

    keys = jax.random.split(jax.random.PRNGKey(0), 16)

    def rnd(k, shape, scale=0.1):
        return (scale * jax.random.normal(k, shape)).astype(jnp.float32)

    params = {
        'w_k': rnd(keys[0], (C, P)), 'b_k': rnd(keys[1], (C,)),
        'w_v': rnd(keys[2], (C, P)), 'b_v': rnd(keys[3], (C,)),
        'w_q': rnd(keys[4], (C, P)), 'b_q': rnd(keys[5], (C,)),
        'w_g': rnd(keys[6], (C, C)),
        'bn_wg_gamma': 1.0 + rnd(keys[7], (C,)),
        'bn_wg_beta': rnd(keys[8], (C,)),
        'bn_wg_mean': rnd(keys[9], (C,)),
        'bn_wg_var': jnp.abs(1.0 + rnd(keys[10], (C,))),
        'w_out': rnd(keys[11], (P, C)), 'b_out': rnd(keys[12], (P,)),
        'bn_out_gamma': 1.0 + rnd(keys[13], (P,)),
        'bn_out_beta': rnd(keys[14], (P,)),
        'bn_out_mean': rnd(keys[15], (P,)),
        'bn_out_var': jnp.ones((P,), jnp.float32),
    }

    x = jax.random.normal(jax.random.PRNGKey(42), (B, P, H, W), jnp.float32)

    out = jax.block_until_ready(spatial_gcn(x, params))
    ref = spatial_gcn_ref(x, params)

    assert out.shape == (B, P, H, W)
    max_err = float(jnp.max(jnp.abs(out - ref)))
    assert max_err < 2e-4, f"mismatch vs reference: {max_err}"
    print("KERNEL_OK")
</pallas_src>

<mosaic_0001>
module attributes {stable_mosaic.version = 11 : i64} {
  func.func @spatial_gcn_kernel(%arg0: i32, %arg1: memref<1x8x256xf32, #tpu.memory_space<vmem>>, %arg2: memref<24x8xf32, #tpu.memory_space<vmem>>, %arg3: memref<24x1xf32, #tpu.memory_space<vmem>>, %arg4: memref<8x8xf32, #tpu.memory_space<vmem>>, %arg5: memref<8x1xf32, #tpu.memory_space<vmem>>, %arg6: memref<1x8x256xf32, #tpu.memory_space<vmem>>) attributes {dimension_semantics = [#tpu.dimension_semantics<parallel>], iteration_bounds = array<i64: 2>, scalar_prefetch = 0 : i64, scratch_operands = 0 : i64, tpu.core_type = #tpu.core_type<tc>, window_params = [{transform_indices = @transform_0, window_bounds = array<i64: 1, 8, 256>}, {pipeline_mode = #tpu.pipeline_mode<synchronous>, transform_indices = @transform_1, window_bounds = array<i64: 24, 8>}, {pipeline_mode = #tpu.pipeline_mode<synchronous>, transform_indices = @transform_2, window_bounds = array<i64: 24, 1>}, {pipeline_mode = #tpu.pipeline_mode<synchronous>, transform_indices = @transform_3, window_bounds = array<i64: 8, 8>}, {pipeline_mode = #tpu.pipeline_mode<synchronous>, transform_indices = @transform_4, window_bounds = array<i64: 8, 1>}, {transform_indices = @transform_5, window_bounds = array<i64: 1, 8, 256>}]} {
    %c0 = arith.constant 0 : index
    %c0_0 = arith.constant 0 : index
    %0 = vector.load %arg2[%c0, %c0_0] : memref<24x8xf32, #tpu.memory_space<vmem>>, vector<24x8xf32>
    %c0_1 = arith.constant 0 : index
    %c0_2 = arith.constant 0 : index
    %c0_3 = arith.constant 0 : index
    %1 = vector.load %arg1[%c0_1, %c0_2, %c0_3] : memref<1x8x256xf32, #tpu.memory_space<vmem>>, vector<1x8x256xf32>
    %2 = vector.shape_cast %1 : vector<1x8x256xf32> to vector<8x256xf32>
    %cst = arith.constant dense<0.000000e+00> : vector<24x256xf32>
    %3 = tpu.matmul %0, %2, %cst {dimension_numbers = #tpu.dot_dimension_numbers<[1], [0], [0], [1], [0, 0, 1, 1], [], []>} : vector<24x8xf32>, vector<8x256xf32>, vector<24x256xf32> -> vector<24x256xf32>
    %c0_4 = arith.constant 0 : index
    %c0_5 = arith.constant 0 : index
    %4 = vector.load %arg3[%c0_4, %c0_5] : memref<24x1xf32, #tpu.memory_space<vmem>>, vector<24x1xf32>
    %5 = vector.broadcast %4 : vector<24x1xf32> to vector<24x256xf32>
    %6 = arith.addf %3, %5 : vector<24x256xf32>
    %7 = vector.extract_strided_slice %6 {offsets = [0, 0], sizes = [8, 256], strides = [1, 1]} : vector<24x256xf32> to vector<8x256xf32>
    %8 = vector.extract_strided_slice %6 {offsets = [8, 0], sizes = [8, 256], strides = [1, 1]} : vector<24x256xf32> to vector<8x256xf32>
    %9 = vector.extract_strided_slice %6 {offsets = [16, 0], sizes = [8, 256], strides = [1, 1]} : vector<24x256xf32> to vector<8x256xf32>
    %cst_6 = arith.constant dense<0.000000e+00> : vector<8x8xf32>
    %10 = tpu.matmul %8, %9, %cst_6 {dimension_numbers = #tpu.dot_dimension_numbers<[1], [1], [0], [0], [0, 0, 1, 0], [], []>} : vector<8x256xf32>, vector<8x256xf32>, vector<8x8xf32> -> vector<8x8xf32>
    %11 = tpu.iota {dimensions = array<i32: 0>} : vector<8x8xi32>
    %c4_i32 = arith.constant 4 : i32
    %12 = vector.broadcast %c4_i32 : i32 to vector<8x8xi32>
    %13 = arith.cmpi slt, %11, %12 : vector<8x8xi32>
    %cst_7 = arith.constant -1.000000e+30 : f32
    %14 = vector.broadcast %cst_7 : f32 to vector<8x8xf32>
    %15 = arith.select %13, %10, %14 : vector<8x8xi1>, vector<8x8xf32>
    %cst_8 = arith.constant dense<0xFF800000> : vector<8xf32>
    %16 = vector.multi_reduction <maximumf>, %15, %cst_8 [0] : vector<8x8xf32> to vector<8xf32>
    %17 = vector.shape_cast %16 : vector<8xf32> to vector<1x8xf32>
    %18 = vector.broadcast %17 : vector<1x8xf32> to vector<8x8xf32>
    %19 = arith.subf %15, %18 : vector<8x8xf32>
    %20 = math.exp %19 : vector<8x8xf32>
    %cst_9 = arith.constant dense<0.000000e+00> : vector<8xf32>
    %21 = vector.multi_reduction <add>, %20, %cst_9 [0] : vector<8x8xf32> to vector<8xf32>
    %22 = vector.shape_cast %21 : vector<8xf32> to vector<1x8xf32>
    %23 = vector.broadcast %22 : vector<1x8xf32> to vector<8x8xf32>
    %24 = arith.divf %20, %23 : vector<8x8xf32>
    %cst_10 = arith.constant dense<0.000000e+00> : vector<8x256xf32>
    %25 = tpu.matmul %24, %7, %cst_10 {dimension_numbers = #tpu.dot_dimension_numbers<[1], [0], [0], [1], [0, 0, 1, 1], [], []>} : vector<8x8xf32>, vector<8x256xf32>, vector<8x256xf32> -> vector<8x256xf32>
    %c0_11 = arith.constant 0 : index
    %c0_12 = arith.constant 0 : index
    %26 = vector.load %arg4[%c0_11, %c0_12] : memref<8x8xf32, #tpu.memory_space<vmem>>, vector<8x8xf32>
    %cst_13 = arith.constant dense<0.000000e+00> : vector<8x256xf32>
    %27 = tpu.matmul %26, %25, %cst_13 {dimension_numbers = #tpu.dot_dimension_numbers<[1], [0], [0], [1], [0, 0, 1, 1], [], []>} : vector<8x8xf32>, vector<8x256xf32>, vector<8x256xf32> -> vector<8x256xf32>
    %c0_14 = arith.constant 0 : index
    %c0_15 = arith.constant 0 : index
    %28 = vector.load %arg5[%c0_14, %c0_15] : memref<8x1xf32, #tpu.memory_space<vmem>>, vector<8x1xf32>
    %29 = vector.broadcast %28 : vector<8x1xf32> to vector<8x256xf32>
    %30 = arith.addf %27, %29 : vector<8x256xf32>
    %c0_16 = arith.constant 0 : index
    %c0_17 = arith.constant 0 : index
    %c0_18 = arith.constant 0 : index
    %31 = vector.load %arg1[%c0_16, %c0_17, %c0_18] : memref<1x8x256xf32, #tpu.memory_space<vmem>>, vector<1x8x256xf32>
    %32 = vector.shape_cast %31 : vector<1x8x256xf32> to vector<8x256xf32>
    %33 = arith.addf %30, %32 : vector<8x256xf32>
    %cst_19 = arith.constant 0.000000e+00 : f32
    %34 = vector.broadcast %cst_19 : f32 to vector<8x256xf32>
    %35 = arith.maximumf %33, %34 : vector<8x256xf32>
    %c0_20 = arith.constant 0 : index
    %c0_21 = arith.constant 0 : index
    %c0_22 = arith.constant 0 : index
    %36 = vector.load %arg6[%c0_20, %c0_21, %c0_22] : memref<1x8x256xf32, #tpu.memory_space<vmem>>, vector<1x8x256xf32>
    %37 = vector.shape_cast %36 : vector<1x8x256xf32> to vector<8x256xf32>
    %38 = vector.shape_cast %35 : vector<8x256xf32> to vector<1x8x256xf32>
    tpu.vector_store %arg6[%c0_20, %c0_21, %c0_22], %38 {strides = array<i32>} : memref<1x8x256xf32, #tpu.memory_space<vmem>>, vector<1x8x256xf32>,
    return
  }
  func.func @transform_0(%arg0: i32) -> (i32, i32, i32) {
    %c0_i32 = arith.constant 0 : i32
    %c0_i32_0 = arith.constant 0 : i32
    %c0_i32_1 = arith.constant 0 : i32
    return %arg0, %c0_i32, %c0_i32_0 : i32, i32, i32
  }
  func.func @transform_1(%arg0: i32) -> (i32, i32) {
    %c0_i32 = arith.constant 0 : i32
    %c0_i32_0 = arith.constant 0 : i32
    %c0_i32_1 = arith.constant 0 : i32
    return %c0_i32, %c0_i32_0 : i32, i32
  }
  func.func @transform_2(%arg0: i32) -> (i32, i32) {
    %c0_i32 = arith.constant 0 : i32
    %c0_i32_0 = arith.constant 0 : i32
    %c0_i32_1 = arith.constant 0 : i32
    return %c0_i32, %c0_i32_0 : i32, i32
  }
  func.func @transform_3(%arg0: i32) -> (i32, i32) {
    %c0_i32 = arith.constant 0 : i32
    %c0_i32_0 = arith.constant 0 : i32
    %c0_i32_1 = arith.constant 0 : i32
    return %c0_i32, %c0_i32_0 : i32, i32
  }
  func.func @transform_4(%arg0: i32) -> (i32, i32) {
    %c0_i32 = arith.constant 0 : i32
    %c0_i32_0 = arith.constant 0 : i32
    %c0_i32_1 = arith.constant 0 : i32
    return %c0_i32, %c0_i32_0 : i32, i32
  }
  func.func @transform_5(%arg0: i32) -> (i32, i32, i32) {
    %c0_i32 = arith.constant 0 : i32
    %c0_i32_0 = arith.constant 0 : i32
    %c0_i32_1 = arith.constant 0 : i32
    return %arg0, %c0_i32, %c0_i32_0 : i32, i32, i32
  }
}

</mosaic_0001>

<bundles_post_ra>
// kernel: tpu_custom_call.1
= control target key start
LH: loop header
LB: loop body
LE: loop exit
PB: predicated region body
PF: predicated region fallthrough
CT: control target
= control target key end

     0   :  { %10 = vsyncpa [#allocation3], 0  ;;  %s974_s0 = inlined_call_operand.vmem [shape: f32[2,8,256], index: 0, kind: input, shape index: {}]   ;;  %s975_s1 = inlined_call_operand.vmem [shape: f32[24,8], index: 1, kind: input, shape index: {}]   ;;  %s976_s2 = inlined_call_operand.vmem [shape: f32[24,1], index: 2, kind: input, shape index: {}]   ;;  %s977_s3 = inlined_call_operand.vmem [shape: f32[8,8], index: 3, kind: input, shape index: {}]   ;;  %s978_s4 = inlined_call_operand.vmem [shape: f32[8,1], index: 4, kind: input, shape index: {}]   ;;  %s979_s5 = inlined_call_operand.hbm [shape: f32[2,8,256], index: 5, kind: output, shape index: {}]  }
   0x1   :  { %12 = vsyncpa [#allocation3 + $0x1], 0  ;;  %s830_s18 = smov 0   ;;  %s832_s19 = smov 0  }
   0x2   :  { %s834_s20 = smov 0   ;;  %s836_s21 = smov 0  }
   0x3 LB: > { %s851_s22 = sadd.s32 4294967295, %s795_s21   ;;  %s667_s23 = sadd.s32 4294967294, %s795_s21   ;;  %s795_s21 = sphi %s836_s21, %s985_s21   ;;  %s791_s20 = sphi %s834_s20, %s984_s20   ;;  %s787_s19 = sphi %s832_s19, %s983_s19   ;;  %s783_s18 = sphi %s830_s18, %s982_s18  }
   0x4   : > { %s855_s24 = sadd.s32 1, %s795_s21   ;;  %s135_s25 = sadd.s32 1, %s791_s20 }
   0x5   : > { %s132_s26 = ssub.s32 %s795_s21, %s855_s24  ;;  %p145_p0 = scmp.ne.s32.totalorder %s791_s20, %s787_s19 }
   0x6   : > { %p133_p1 = scmp.eq.s32.totalorder %s132_s26, 0  ;;  %p146_p2 = scmp.eq.s32.totalorder %s851_s22, 1 }
   0x7   : > { %p151_p3 = scmp.ne.s32.totalorder %s787_s19, %s783_s18  ;;  %p152_p4 = scmp.eq.s32.totalorder %s667_s23, 1 }
   0x8   : > { %s866_s27 = scalar_select %p133_p1, %s791_s20, %s135_s25  }
   0x9   : > { %p868_p5 = por %p146_p2, %p145_p0  ;;  %p872_p6 = por %p152_p4, %p151_p3 }
   0xa   : > { %p670_p7 = scmp.ge.s32.totalorder %s795_s21, 1  ;;  %p190_p8 = scmp.lt.s32.totalorder %s795_s21, 3 }
   0xc   : > { %p191_p9 = pnand %p670_p7, %p190_p8 }
   0xd   : > { %p218_p10 = scmp.lt.s32.totalorder (!%p191_p9), %s851_s22, 1  ;;  %v797_v0 = vmov (!%p191_p9), 0.0   ;;  %v230_v1 = vld [vmem:[%s976_s2 + $0x10] sm:$0xff] (!%p191_p9)  ;;  %v228_v2 = vld [vmem:[%s976_s2] sm:$0xff] (!%p191_p9)  ;;  %v798_v3 = vmov (!%p191_p9), 0   ;;  %v229_v4 = vld [vmem:[%s976_s2 + $0x8] sm:$0xff] (!%p191_p9)  ;;  %v409_v26 = vlaneseq (!%p191_p9) }
   0xe   : > { %194 = sbr.rel (%p191_p9) target bundleno = 970 (0x3ca), region = 40  ;;  %320 = vmatprep.mubr.f32.mxu0 (!%p191_p9), %v797_v0  ;;  %728 = vset.pattern.permute.xlu1 (!%p191_p9), %v798_v3  ;;  %v223_v7 = vld [vmem:[%s975_s1] sm:$0xff] (!%p191_p9)  ;;  %vm246_vm0 = vcmask (!%p191_p9), 64512   ;;  %v224_v8 = vld [vmem:[%s975_s1 + $0x8] sm:$0xff] (!%p191_p9)  ;;  %v225_v9 = vld [vmem:[%s975_s1 + $0x10] sm:$0xff] (!%p191_p9)  ;;  %s685_s12 = sshll.u32 (!%p191_p9), %s851_s22, 8 }
   0xf   : > { %727 = vset.pattern.permute.xlu0 (!%p191_p9), %v798_v3  ;;  %233 = vperm.xlu1 (!%p191_p9), %728, %v228_v2   ;;  %v507_v10 = vld [vmem:[%s978_s4] sm:$0xff] (!%p191_p9)  ;;  %v410_v27 = vshrl.u32 (!%p191_p9), %v409_v26, 7  ;;  %s932_s17 = scalar_lea.hbm (!%p191_p9), %s979_s5, %s685_s12  ;;  %s799_s25 = smov (!%p191_p9), [#allocation2]  }
  0x10   : > { %243 = vperm.xlu0 (!%p191_p9), %727, %v230_v1   ;;  %v506_v52 = vld [vmem:[%s977_s3] sm:$0xff] (!%p191_p9)  ;;  %s737_s26 = sshll.u32 (!%p191_p9), %s799_s25, 4  ;;  %s738_s26 = int_to_ptr.vmem [resolvable:$false] %s737_s26 }
  0x11   : > { %vm411_vm1 = vcmp.lt.s32.totalorder (!%p191_p9), %v410_v27, 4  ;;  %s739_s30 = scalar_lea.vmem (!%p191_p9), %s738_s26, 512 }
  0x13   : > { %510 = vperm.xlu1 (!%p191_p9), %728, %v507_v10  }
  0x14   : > { %238 = vperm.xlu0 (!%p191_p9), %727, %v229_v4  }
  0x15   : > { %s219_s9 = scalar_select %p218_p10, %s851_s22, 1 }
  0x17   : > { %s684_s10 = sshll.u32 %s219_s9, 4 }
  0x18   : > { %s222_s15 = scalar_lea.vmem %s974_s0, %s684_s10  ;;  %s215_s10 = sand.u32 1, %s787_s19  }
  0x19   : > { %v893_v5 = vld [vmem:[%s222_s15 + $0x8] sm:$0xff]  ;;  %v895_v6 = vld [vmem:[%s222_s15] sm:$0xff]  ;;  %s671_s11 = sshll.u32 %s215_s10, 4  ;;  %s594_s23 = scalar_lea.sflag [#allocation3], %s215_s10 }
  0x1a   : > { %256 = vmatprep.subr.mxu0 %v893_v5  ;;  %s217_s13 = scalar_lea.vmem [#allocation2], %s671_s11 }
  0x1b   : > { %257 = vmatpush1.msra.mxu0 %v895_v6  ;;  %s608_s14 = sshll.u32 %s217_s13, 4  ;;  %s934_s14 = int_to_ptr.vmem [resolvable:$true] %s608_s14 }
  0x1c   : > { %674 = vmatmul.mubr.msk.f32.vlgmr.msra.gmra.mrb[0].mxu0 %vm246_vm0, %v223_v7  ;;  %s733_s22 = scalar_lea.vmem %s934_s14, 256  ;;  %p740_p0 = scmp.lt.s32.totalorder %s934_s14, %s738_s26 }
  0x1d   : > { %326 = vmatprep.mubr.f32.mxu0 %v797_v0  ;;  %p734_p11 = scmp.ne.s32.totalorder %s934_s14, %s733_s22  ;;  %p741_p1 = scmp.lt.s32.totalorder %s739_s30, %s733_s22 }
  0x1f   : > { %p735_p12 = pnand %p734_p11, %p868_p5  ;;  %p742_p2 = por %p741_p1, %p740_p0 }
  0x20   : > { %675 = vmatmul.mubr.msk.f32.gmra.mrb[2].mxu0 %vm246_vm0, %v224_v8 }
  0x21   : > { %332 = vmatprep.mubr.f32.mxu0 %v797_v0  ;;  %p736_p13 = pneg %p735_p12 }
  0x23   : > { %p743_p3 = pnand %p742_p2, %p736_p13 }
  0x24   : > { %676 = vmatmul.mubr.msk.f32.gmra.mrb[4].mxu0 %vm246_vm0, %v225_v9 }
  0x8e   : > { %v234_v19 = vpop.permute.xlu1 %233 }
  0x8f   : > { %v244_v11 = vpop.permute.xlu0 %243 }
  0x92   : > { %v511_v53 = vpop.permute.xlu1 %510 }
  0x93   : > { %v239_v14 = vpop.permute.xlu0 %238 }
  0xef   : > { %v322_v12 = vpop.f32.mrb[0].mxu0 }
  0xf0   : > { %v324_v13 = vpop.f32.mrb[1].mxu0  ;;  %v323_v25 = vadd.f32 %v322_v12, %v234_v19 }
  0xf1   : > { %v325_v23 = vadd.f32 %v324_v13, %v234_v19 }
  0xf3   : > { %v328_v15 = vpop.f32.mrb[2].mxu0 }
  0xf4   : > { %v330_v16 = vpop.f32.mrb[3].mxu0  ;;  %v329_v24 = vadd.f32 %v328_v15, %v239_v14 }
  0xf5   : > { %v331_v17 = vadd.f32 %v330_v16, %v239_v14 }
  0xf7   : > { %v334_v18 = vpop.f32.mrb[4].mxu0  ;;  %403 = vmatprep.mubr.f32.mxu1 %v331_v17 }
  0xf8   : > { %v336_v20 = vpop.f32.mrb[5].mxu0  ;;  %v335_v22 = vadd.f32 %v334_v18, %v244_v11 }
  0xf9   : > { %v337_v21 = vadd.f32 %v336_v20, %v244_v11 }
  0xfb   : > { %339 = vmatprep.subr.mxu1 %v337_v21 }
  0xfc   : > { %340 = vmatpush1.xpose.msra.mxu1 %v335_v22 }
  0xfd   : > { %435 = vmatprep.subr.mxu1 %v325_v23 }
  0xff   : > { %404 = vmatmul.mubr.f32.vlgmr.msra.gmra.mrb[0].mxu1 %v329_v24 }
 0x100   : > { %436 = vmatpush1.msra.mxu1 %v323_v25  ;;  %499 = vmatprep.mubr.f32.mxu1 %v797_v0 }
 0x1d2   : > { %v405_v28 = vpop.f32.mrb[0].mxu1 }
 0x1d3   : > { %v412_v29 = vsel %vm411_vm1, %v405_v28, -1e+30  ;;  %v407_v30 = vpop.f32.mrb[1].mxu1 }
 0x1d4   : > { %v413_v31 = vsel %vm246_vm0, %v412_v29, -inf }
 0x1d5   : > { %v414_v32 = vrot.slane %v413_v31, 4 }
 0x1d7   : > { %v415_v33 = vmax.f32 %v413_v31, %v414_v32 }
 0x1d9   : > { %v416_v34 = vrot.slane %v415_v33, 2 }
 0x1db   : > { %v417_v35 = vmax.f32 %v415_v33, %v416_v34 }
 0x1dd   : > { %v418_v36 = vrot.slane %v417_v35, 1 }
 0x1df   : > { %v419_v37 = vmax.f32 %v417_v35, %v418_v36 }
 0x1e1   : > { %v420_v38 = vsub.f32 %v412_v29, %v419_v37 }
 0x1e3   : > { %v421_v39 = vmul.f32 1.442695, %v420_v38 }
 0x1e5   : > { %729 = vpow2.f32 %v421_v39 }
 0x1ef   : > { %v730_v40 = vpop.eup %729 }
 0x1f0   : > { %v423_v41 = vsel %vm246_vm0, %v730_v40, 0.0 }
 0x1f1   : > { %v424_v42 = vrot.slane %v423_v41, 4 }
 0x1f3   : > { %v425_v43 = vadd.f32 %v424_v42, %v423_v41 }
 0x1f5   : > { %v426_v44 = vrot.slane %v425_v43, 2 }
 0x1f7   : > { %v427_v45 = vadd.f32 %v426_v44, %v425_v43 }
 0x1f9   : > { %v428_v46 = vrot.slane %v427_v45, 1 }
 0x1fb   : > { %v429_v47 = vadd.f32 %v428_v46, %v427_v45 }
 0x1fd   : > { %731 = vrcp.f32 %v429_v47 }
 0x207   : > { %v732_v48 = vpop.eup %731 }
 0x208   : > { %v431_v49 = vmul.f32 %v732_v48, %v730_v40 }
 0x20a   : > { %677 = vmatmul.mubr.msk.f32.vlgmr.msra.gmra.mrb[2].mxu1 %vm246_vm0, %v431_v49 }
 0x20b   : > { %580 = vmatprep.mubr.f32.mxu1 %v797_v0 }
 0x2dd   : > { %v501_v50 = vpop.f32.mrb[2].mxu1 }
 0x2de   : > { %v503_v51 = vpop.f32.mrb[3].mxu1 }
 0x2df   : > { %516 = vmatprep.subr.mxu1 %v503_v51 }
 0x2e0   : > { %517 = vmatpush1.msra.mxu1 %v501_v50 }
 0x2e1   : > { %678 = vmatmul.mubr.msk.f32.vlgmr.msra.gmra.mrb[4].mxu1 %vm246_vm0, %v506_v52 }
 0x3b4   : > { %v582_v54 = vpop.f32.mrb[4].mxu1 }
 0x3b5   : > { %v583_v55 = vadd.f32 %v582_v54, %v511_v53  ;;  %v584_v56 = vpop.f32.mrb[5].mxu1 }
 0x3b6   : > { %v585_v57 = vadd.f32 %v584_v56, %v511_v53 }
 0x3b7   : > { %v587_v58 = vadd.f32 %v583_v55, %v895_v6 }
 0x3b8   : > { %v588_v59 = vadd.f32 %v585_v57, %v893_v5 }
 0x3b9   : > { %v589_v60 = vmax.f32 %v587_v58, 0.0 }
 0x3ba   : > { %v590_v61 = vmax.f32 %v588_v59, 0.0 }
 0x3bb   : > { %591 = vst [vmem:[%s217_s13] sm:$0xff] %v589_v60 }
 0x3bc   : > { %592 = vst [vmem:[%s217_s13 + $0x8] sm:$0xff] %v590_v61 }
 0x3bd   : > { %746 = shalt.err (!%p743_p3)
}
 0x3be   : > { %s747_s6 = scalar_lea.hbm %s932_s17, 256  ;;  %s751_s9 = scalar_lea.hbm %s979_s5, 512 }
 0x3bf   : > { %p748_p4 = scmp.ne.s32.totalorder %s932_s17, %s747_s6  ;;  %p752_p9 = scmp.lt.u32.totalorder %s932_s17, %s979_s5 }
 0x3c0   : > { %p753_p10 = scmp.lt.u32.totalorder %s751_s9, %s747_s6  ;;  %p755_p12 = scmp.lt.u32.totalorder %s747_s6, %s932_s17 }
 0x3c1   : > { %p749_p7 = pnand %p748_p4, %p868_p5 }
 0x3c2   : > { %p754_p11 = por %p753_p10, %p752_p9 }
 0x3c3   : > { %p750_p8 = pneg %p749_p7 }
 0x3c4   : > { %p756_p13 = por %p755_p12, %p754_p11 }
 0x3c6   : > { %p757_p0 = pnand %p756_p13, %p750_p8 }
 0x3c8   : > { %760 = shalt.err (!%p757_p0)
}
 0x3c9   : > { %686 = dma.vmem_to_hbm [thread:$0]  (%p868_p5), %s934_s14, 256, %s932_s17, %s594_s23  }
 0x3ca PF: > { %p692_p1 = scmp.ge.s32.totalorder %s795_s21, 2  ;;  %s620_s12 = sand.u32 1, %s783_s18  }
 0x3cb   : > { %s621_s13 = scalar_lea.sflag [#allocation3], %s620_s12 }
 0x3cc   : > { %p689_p2 = pnand %p692_p1, %p872_p6 }
 0x3ce   : > { %778 = dma.done.wait (!%p689_p2), %s621_s13, 256  }
 0x3cf   : > { %780 = vsyncadd (!%p689_p2), %s621_s13, 4294967040  ;;  %p15_p3 = scmp.ge.s32.totalorder %s855_s24, 4   ;;  %s982_s18 = smov %s787_s19 }
 0x3d0   : > { %s983_s19 = smov %s791_s20  ;;  %s984_s20 = smov %s866_s27 }
 0x3d1   : > { %s985_s21 = smov %s855_s24  ;;  %17 = sbr.rel (!%p15_p3) target bundleno = 3 (0x3), region = 75 }
 0x3d8   :  { %626 = vsyncpa [#allocation3], 1 }
 0x3d9   :  { %628 = vsyncpa [#allocation3 + $0x1], 1 }

</bundles_post_ra>
